<compile_context>
chip_gen: v5e
topology: v5e:2x2
jax: 0.10.0
libtpu: 0.0.40
codegen_flags: <defaults>
</compile_context>

<pallas_src>
import functools
import math

import jax
import jax.numpy as jnp
from jax.experimental import pallas as pl
from jax.experimental.pallas import tpu as pltpu

NUM_HEADS = 2
LN_EPS = 1e-5


# --------------------------------------------------------------------------- #
# Kernel
# --------------------------------------------------------------------------- #
def _mix_transformer_kernel(
    x_ref,      # (T, E)             T = L * N tokens, row t <-> (l=t//N, n=t%N)
    wqkv_ref,   # (E, NH*3*hd)       fused per-head [Wq_h | Wk_h | Wv_h] blocks
    wo_ref,     # (NH, hd, E)        per-head slice of out_proj (pre-transposed)
    w1_ref,     # (E, H)             linear1.weight.T
    w2_ref,     # (H, E)             linear2.weight.T
    vec_ref,    # (8, 128)           packed bias / LayerNorm row vectors
    o_ref,      # (T, E)
    *,
    n_batch,
):
    f32 = jnp.float32
    x = x_ref[...].astype(f32)                       # (T, E)
    T, E = x.shape
    NH, hd, _ = wo_ref.shape
    H = w1_ref.shape[1]
    scale = 1.0 / math.sqrt(hd)

    # Packed row-vector layout (see pack_params): lane-prefix slices only.
    r_bqkv, r_bo, r_b1, r_b2, r_g1, r_be1, r_g2, r_be2 = range(8)

    def vrow(i, n):                                  # -> (1, n), f32
        return vec_ref[i:i + 1, :n].astype(f32)

    # Additive block-diagonal attention mask: token t belongs to batch t % N.
    row_b = jax.lax.broadcasted_iota(jnp.int32, (T, T), 0) % n_batch
    col_b = jax.lax.broadcasted_iota(jnp.int32, (T, T), 1) % n_batch
    mask_add = jnp.where(row_b == col_b, 0.0, -1e30).astype(f32)

    # ---- multi-head self-attention -----------------------------------------
    # One fused projection matmul for all heads / all of Q,K,V.
    qkv = jnp.dot(x, wqkv_ref[...].astype(f32),
                  preferred_element_type=f32) + vrow(r_bqkv, NH * 3 * hd)

    attn = jnp.zeros((T, E), f32)
    for h in range(NH):                              # static, NH == 2
        base = h * 3 * hd
        q = qkv[:, base:base + hd]                   # (T, hd)
        k = qkv[:, base + hd:base + 2 * hd]          # (T, hd)
        v = qkv[:, base + 2 * hd:base + 3 * hd]      # (T, hd)

        # scores = (q * scale) @ k^T  (contraction on head_dim, no explicit .T)
        s = jax.lax.dot_general(q * scale, k,
                                dimension_numbers=(((1,), (1,)), ((), ())),
                                preferred_element_type=f32)            # (T, T)
        s = s + mask_add
        s = s - jnp.max(s, axis=-1, keepdims=True)
        p = jnp.exp(s)
        p = p * pl.reciprocal(jnp.sum(p, axis=-1, keepdims=True), approx=True)

        ctx = jnp.dot(p, v, preferred_element_type=f32)                # (T, hd)
        attn = attn + jnp.dot(ctx, wo_ref[h].astype(f32),
                              preferred_element_type=f32)              # (T, E)
    attn = attn + vrow(r_bo, E)

    # ---- residual + LayerNorm 1 --------------------------------------------
    x1 = x + attn
    mu1 = jnp.mean(x1, axis=-1, keepdims=True)
    d1 = x1 - mu1
    var1 = jnp.mean(d1 * d1, axis=-1, keepdims=True)
    x1n = d1 * jax.lax.rsqrt(var1 + LN_EPS)
    x1n = x1n * vrow(r_g1, E) + vrow(r_be1, E)

    # ---- feedforward --------------------------------------------------------
    h1 = jnp.dot(x1n, w1_ref[...].astype(f32),
                 preferred_element_type=f32) + vrow(r_b1, H)
    h1 = jnp.maximum(h1, 0.0)
    ff = jnp.dot(h1, w2_ref[...].astype(f32),
                 preferred_element_type=f32) + vrow(r_b2, E)

    # ---- residual + LayerNorm 2 --------------------------------------------
    x2 = x1n + ff
    mu2 = jnp.mean(x2, axis=-1, keepdims=True)
    d2 = x2 - mu2
    var2 = jnp.mean(d2 * d2, axis=-1, keepdims=True)
    x2n = d2 * jax.lax.rsqrt(var2 + LN_EPS)
    x2n = x2n * vrow(r_g2, E) + vrow(r_be2, E)

    o_ref[...] = x2n.astype(o_ref.dtype)


# --------------------------------------------------------------------------- #
# Parameters (PyTorch-shaped) and one-time kernel-layout packing
# --------------------------------------------------------------------------- #
def init_params(key, input_size, hidden_size):
    """Deterministic synthetic parameters with PyTorch module shapes."""
    E, H = input_size, hidden_size
    ks = jax.random.split(key, 8)
    s = 0.05
    return dict(
        in_proj_weight=jax.random.normal(ks[0], (3 * E, E), jnp.float32) * s,
        in_proj_bias=jax.random.normal(ks[1], (3 * E,), jnp.float32) * s,
        out_proj_weight=jax.random.normal(ks[2], (E, E), jnp.float32) * s,
        out_proj_bias=jax.random.normal(ks[3], (E,), jnp.float32) * s,
        linear1_weight=jax.random.normal(ks[4], (H, E), jnp.float32) * s,
        linear1_bias=jax.random.normal(ks[5], (H,), jnp.float32) * s,
        linear2_weight=jax.random.normal(ks[6], (E, H), jnp.float32) * s,
        linear2_bias=jax.random.normal(ks[7], (E,), jnp.float32) * s,
        ln1_weight=jnp.ones((E,), jnp.float32),
        ln1_bias=jnp.zeros((E,), jnp.float32),
        ln2_weight=jnp.ones((E,), jnp.float32),
        ln2_bias=jnp.zeros((E,), jnp.float32),
    )


def pack_params(p, num_heads=NUM_HEADS):
    """One-time conversion to kernel layout: fused/pre-transposed weights,
    per-head out_proj split, all row vectors packed into one (8, 128) array."""
    E = p["out_proj_weight"].shape[0]
    H = p["linear1_weight"].shape[0]
    hd = E // num_heads

    wq, wk, wv = jnp.split(p["in_proj_weight"], 3, axis=0)      # each (E, E)
    bq, bk, bv = jnp.split(p["in_proj_bias"], 3)                # each (E,)
    wqT, wkT, wvT = wq.T, wk.T, wv.T                            # (E_in, E_out)

    # Fused projection: per head a contiguous column block [Wq_h | Wk_h | Wv_h].
    col_blocks, bias_blocks = [], []
    for h in range(num_heads):
        sl = slice(h * hd, (h + 1) * hd)
        col_blocks.append(jnp.concatenate([wqT[:, sl], wkT[:, sl], wvT[:, sl]],
                                          axis=1))
        bias_blocks.append(jnp.concatenate([bq[sl], bk[sl], bv[sl]]))
    wqkv = jnp.concatenate(col_blocks, axis=1)                  # (E, NH*3*hd)
    b_qkv = jnp.concatenate(bias_blocks)                        # (NH*3*hd,)

    # out_proj decomposed per head: (NH, hd, E); attn = sum_h ctx_h @ wo_h[h]
    wo_h = p["out_proj_weight"].T.reshape(num_heads, hd, E)
    w1t = p["linear1_weight"].T                                 # (E, H)
    w2t = p["linear2_weight"].T                                 # (H, E)

    pw = ((max(num_heads * 3 * hd, H, E) + 127) // 128) * 128   # lane pad

    def row(v):
        v = v.reshape(1, -1)
        return jnp.pad(v, ((0, 0), (0, pw - v.shape[1])))

    rows = [row(b_qkv),
            row(p["out_proj_bias"]), row(p["linear1_bias"]), row(p["linear2_bias"]),
            row(p["ln1_weight"]), row(p["ln1_bias"]),
            row(p["ln2_weight"]), row(p["ln2_bias"])]
    vecs = jnp.concatenate(rows, axis=0)                        # (8, pw)

    return dict(wqkv=wqkv, wo=wo_h, w1=w1t, w2=w2t, vecs=vecs)


# --------------------------------------------------------------------------- #
# Wrapper
# --------------------------------------------------------------------------- #
@jax.jit
def mix_transformer_layer(x_lne, kp):
    """x_lne: (L, N, E) -- PyTorch nn.MultiheadAttention default layout."""
    L, N, E = x_lne.shape
    T = L * N
    # (L, N, E) -> (L*N, E) is a free row-major reshape (no transpose kernel).
    x2d = x_lne.reshape(T, E)

    args = (x2d, kp["wqkv"], kp["wo"], kp["w1"], kp["w2"], kp["vecs"])

    def full_spec(a):
        nd = a.ndim
        return pl.BlockSpec(a.shape, lambda i, nd=nd: (0,) * nd)

    kernel = functools.partial(_mix_transformer_kernel, n_batch=N)

    out2d = pl.pallas_call(
        kernel,
        out_shape=jax.ShapeDtypeStruct((T, E), x_lne.dtype),
        grid_spec=pltpu.PrefetchScalarGridSpec(
            num_scalar_prefetch=0,
            grid=(1,),                                 # single step: no per-step
            in_specs=[full_spec(a) for a in args],     # pipeline overhead
            out_specs=pl.BlockSpec((T, E), lambda i: (0, 0)),
        ),
        compiler_params=pltpu.CompilerParams(
            dimension_semantics=("arbitrary",)),
    )(*args)

    return out2d.reshape(L, N, E)                      # free reshape back


# --------------------------------------------------------------------------- #
# Pure-JAX reference (PyTorch eval semantics) for a correctness cross-check
# --------------------------------------------------------------------------- #
def _layer_norm(x, g, b):
    mu = jnp.mean(x, axis=-1, keepdims=True)
    d = x - mu
    var = jnp.mean(d * d, axis=-1, keepdims=True)
    return d * jax.lax.rsqrt(var + LN_EPS) * g + b


def reference_forward(x_lne, p, num_heads=NUM_HEADS):
    L, N, E = x_lne.shape
    hd = E // num_heads
    x = x_lne.astype(jnp.float32)

    qkv = jnp.einsum("lne,fe->lnf", x, p["in_proj_weight"]) + p["in_proj_bias"]
    q, k, v = jnp.split(qkv, 3, axis=-1)

    def heads(t):  # (L, N, E) -> (N, NH, L, hd)
        return t.reshape(L, N, num_heads, hd).transpose(1, 2, 0, 3)

    qh, kh, vh = heads(q), heads(k), heads(v)
    s = jnp.einsum("bhqd,bhkd->bhqk", qh, kh) / math.sqrt(hd)
    pattn = jax.nn.softmax(s, axis=-1)
    ctx = jnp.einsum("bhqk,bhkd->bhqd", pattn, vh)
    ctx = ctx.transpose(2, 0, 1, 3).reshape(L, N, E)
    attn_out = jnp.einsum("lne,fe->lnf", ctx, p["out_proj_weight"]) \
        + p["out_proj_bias"]

    x1 = _layer_norm(x + attn_out, p["ln1_weight"], p["ln1_bias"])
    h1 = jax.nn.relu(jnp.einsum("lne,he->lnh", x1, p["linear1_weight"])
                     + p["linear1_bias"])
    ff = jnp.einsum("lnh,eh->lne", h1, p["linear2_weight"]) + p["linear2_bias"]
    return _layer_norm(x1 + ff, p["ln2_weight"], p["ln2_bias"])


# --------------------------------------------------------------------------- #
if __name__ == "__main__":
    # seq=8, batch=2, input_size=32, hidden_size=64, num_heads=2 (head_dim=16)
    L, N, E, H = 8, 2, 32, 64
    key = jax.random.PRNGKey(0)
    k_x, k_p = jax.random.split(key)
    x = jax.random.normal(k_x, (L, N, E), jnp.float32)

    params = init_params(k_p, E, H)          # PyTorch-shaped
    kparams = pack_params(params)            # one-time kernel layout

    y = mix_transformer_layer(x, kparams)
    jax.block_until_ready(y)
    assert y.shape == (L, N, E)

    y_ref = reference_forward(x, params)
    max_err = float(jnp.max(jnp.abs(y - y_ref)))
    assert max_err < 2e-3, f"mismatch vs reference: {max_err}"

    print("KERNEL_OK")
</pallas_src>

<mosaic_0001>
module attributes {stable_mosaic.version = 11 : i64} {
  func.func @_mix_transformer_kernel(%arg0: i32, %arg1: memref<16x32xf32, #tpu.memory_space<vmem>>, %arg2: memref<32x96xf32, #tpu.memory_space<vmem>>, %arg3: memref<2x16x32xf32, #tpu.memory_space<vmem>>, %arg4: memref<32x64xf32, #tpu.memory_space<vmem>>, %arg5: memref<64x32xf32, #tpu.memory_space<vmem>>, %arg6: memref<8x128xf32, #tpu.memory_space<vmem>>, %arg7: memref<16x32xf32, #tpu.memory_space<vmem>>) attributes {dimension_semantics = [#tpu.dimension_semantics<arbitrary>], iteration_bounds = array<i64: 1>, scalar_prefetch = 0 : i64, scratch_operands = 0 : i64, tpu.core_type = #tpu.core_type<tc>, window_params = [{pipeline_mode = #tpu.pipeline_mode<synchronous>, transform_indices = @transform_0, window_bounds = array<i64: 16, 32>}, {pipeline_mode = #tpu.pipeline_mode<synchronous>, transform_indices = @transform_1, window_bounds = array<i64: 32, 96>}, {pipeline_mode = #tpu.pipeline_mode<synchronous>, transform_indices = @transform_2, window_bounds = array<i64: 2, 16, 32>}, {pipeline_mode = #tpu.pipeline_mode<synchronous>, transform_indices = @transform_3, window_bounds = array<i64: 32, 64>}, {pipeline_mode = #tpu.pipeline_mode<synchronous>, transform_indices = @transform_4, window_bounds = array<i64: 64, 32>}, {pipeline_mode = #tpu.pipeline_mode<synchronous>, transform_indices = @transform_5, window_bounds = array<i64: 8, 128>}, {pipeline_mode = #tpu.pipeline_mode<synchronous>, transform_indices = @transform_6, window_bounds = array<i64: 16, 32>}]} {
    %c0 = arith.constant 0 : index
    %c0_0 = arith.constant 0 : index
    %0 = vector.load %arg1[%c0, %c0_0] : memref<16x32xf32, #tpu.memory_space<vmem>>, vector<16x32xf32>
    %1 = tpu.iota {dimensions = array<i32: 0>} : vector<16x16xi32>
    %c2_i32 = arith.constant 2 : i32
    %c0_i32 = arith.constant 0 : i32
    %2 = arith.cmpi eq, %c2_i32, %c0_i32 : i32
    %c1_i32 = arith.constant 1 : i32
    %3 = arith.select %2, %c1_i32, %c2_i32 : i32
    %4 = vector.broadcast %3 : i32 to vector<16x16xi32>
    %5 = arith.remsi %1, %4 : vector<16x16xi32>
    %c0_i32_1 = arith.constant 0 : i32
    %6 = vector.broadcast %c0_i32_1 : i32 to vector<16x16xi32>
    %7 = arith.cmpi ne, %5, %6 : vector<16x16xi32>
    %c0_i32_2 = arith.constant 0 : i32
    %8 = vector.broadcast %c0_i32_2 : i32 to vector<16x16xi32>
    %9 = arith.cmpi slt, %5, %8 : vector<16x16xi32>
    %c0_i32_3 = arith.constant 0 : i32
    %10 = arith.cmpi slt, %3, %c0_i32_3 : i32
    %11 = vector.broadcast %10 : i1 to vector<16x16xi1>
    %12 = vector.broadcast %11 : vector<16x16xi1> to vector<16x16xi1>
    %13 = arith.xori %9, %12 : vector<16x16xi1>
    %14 = arith.andi %13, %7 : vector<16x16xi1>
    %15 = vector.broadcast %3 : i32 to vector<16x16xi32>
    %16 = arith.addi %5, %15 : vector<16x16xi32>
    %17 = arith.select %14, %16, %5 : vector<16x16xi1>, vector<16x16xi32>
    %18 = tpu.iota {dimensions = array<i32: 1>} : vector<16x16xi32>
    %c2_i32_4 = arith.constant 2 : i32
    %c0_i32_5 = arith.constant 0 : i32
    %19 = arith.cmpi eq, %c2_i32_4, %c0_i32_5 : i32
    %c1_i32_6 = arith.constant 1 : i32
    %20 = arith.select %19, %c1_i32_6, %c2_i32_4 : i32
    %21 = vector.broadcast %20 : i32 to vector<16x16xi32>
    %22 = arith.remsi %18, %21 : vector<16x16xi32>
    %c0_i32_7 = arith.constant 0 : i32
    %23 = vector.broadcast %c0_i32_7 : i32 to vector<16x16xi32>
    %24 = arith.cmpi ne, %22, %23 : vector<16x16xi32>
    %c0_i32_8 = arith.constant 0 : i32
    %25 = vector.broadcast %c0_i32_8 : i32 to vector<16x16xi32>
    %26 = arith.cmpi slt, %22, %25 : vector<16x16xi32>
    %c0_i32_9 = arith.constant 0 : i32
    %27 = arith.cmpi slt, %20, %c0_i32_9 : i32
    %28 = vector.broadcast %27 : i1 to vector<16x16xi1>
    %29 = vector.broadcast %28 : vector<16x16xi1> to vector<16x16xi1>
    %30 = arith.xori %26, %29 : vector<16x16xi1>
    %31 = arith.andi %30, %24 : vector<16x16xi1>
    %32 = vector.broadcast %20 : i32 to vector<16x16xi32>
    %33 = arith.addi %22, %32 : vector<16x16xi32>
    %34 = arith.select %31, %33, %22 : vector<16x16xi1>, vector<16x16xi32>
    %35 = arith.cmpi eq, %17, %34 : vector<16x16xi32>
    %cst = arith.constant 0.000000e+00 : f32
    %cst_10 = arith.constant -1.000000e+30 : f32
    %36 = vector.broadcast %cst : f32 to vector<16x16xf32>
    %37 = vector.broadcast %cst_10 : f32 to vector<16x16xf32>
    %38 = arith.select %35, %36, %37 : vector<16x16xi1>, vector<16x16xf32>
    %c0_11 = arith.constant 0 : index
    %c0_12 = arith.constant 0 : index
    %39 = vector.load %arg2[%c0_11, %c0_12] : memref<32x96xf32, #tpu.memory_space<vmem>>, vector<32x96xf32>
    %cst_13 = arith.constant dense<0.000000e+00> : vector<16x96xf32>
    %40 = tpu.matmul %0, %39, %cst_13 {dimension_numbers = #tpu.dot_dimension_numbers<[1], [0], [0], [1], [0, 0, 1, 1], [], []>} : vector<16x32xf32>, vector<32x96xf32>, vector<16x96xf32> -> vector<16x96xf32>
    %c0_14 = arith.constant 0 : index
    %c0_15 = arith.constant 0 : index
    %41 = vector.load %arg6[%c0_14, %c0_15] : memref<8x128xf32, #tpu.memory_space<vmem>>, vector<1x96xf32>
    %42 = vector.broadcast %41 : vector<1x96xf32> to vector<16x96xf32>
    %43 = arith.addf %40, %42 : vector<16x96xf32>
    %cst_16 = arith.constant 0.000000e+00 : f32
    %44 = vector.broadcast %cst_16 : f32 to vector<16x32xf32>
    %45 = vector.extract_strided_slice %43 {offsets = [0, 0], sizes = [16, 16], strides = [1, 1]} : vector<16x96xf32> to vector<16x16xf32>
    %46 = vector.extract_strided_slice %43 {offsets = [0, 16], sizes = [16, 16], strides = [1, 1]} : vector<16x96xf32> to vector<16x16xf32>
    %47 = vector.extract_strided_slice %43 {offsets = [0, 32], sizes = [16, 16], strides = [1, 1]} : vector<16x96xf32> to vector<16x16xf32>
    %cst_17 = arith.constant 2.500000e-01 : f32
    %48 = vector.broadcast %cst_17 : f32 to vector<16x16xf32>
    %49 = arith.mulf %45, %48 : vector<16x16xf32>
    %cst_18 = arith.constant dense<0.000000e+00> : vector<16x16xf32>
    %50 = tpu.matmul %49, %46, %cst_18 {dimension_numbers = #tpu.dot_dimension_numbers<[1], [1], [0], [0], [0, 0, 1, 0], [], []>} : vector<16x16xf32>, vector<16x16xf32>, vector<16x16xf32> -> vector<16x16xf32>
    %51 = arith.addf %50, %38 : vector<16x16xf32>
    %cst_19 = arith.constant dense<0xFF800000> : vector<16xf32>
    %52 = vector.multi_reduction <maximumf>, %51, %cst_19 [1] : vector<16x16xf32> to vector<16xf32>
    %53 = vector.shape_cast %52 : vector<16xf32> to vector<16x1xf32>
    %54 = vector.broadcast %53 : vector<16x1xf32> to vector<16x16xf32>
    %55 = arith.subf %51, %54 : vector<16x16xf32>
    %56 = math.exp %55 : vector<16x16xf32>
    %cst_20 = arith.constant dense<0.000000e+00> : vector<16xf32>
    %57 = vector.multi_reduction <add>, %56, %cst_20 [1] : vector<16x16xf32> to vector<16xf32>
    %58 = vector.shape_cast %57 : vector<16xf32> to vector<16x1xf32>
    %59 = tpu.reciprocal %58 {approx = true} : vector<16x1xf32> -> vector<16x1xf32>
    %60 = vector.broadcast %59 : vector<16x1xf32> to vector<16x16xf32>
    %61 = arith.mulf %56, %60 : vector<16x16xf32>
    %cst_21 = arith.constant dense<0.000000e+00> : vector<16x16xf32>
    %62 = tpu.matmul %61, %47, %cst_21 {dimension_numbers = #tpu.dot_dimension_numbers<[1], [0], [0], [1], [0, 0, 1, 1], [], []>} : vector<16x16xf32>, vector<16x16xf32>, vector<16x16xf32> -> vector<16x16xf32>
    %c0_22 = arith.constant 0 : index
    %c0_23 = arith.constant 0 : index
    %c0_24 = arith.constant 0 : index
    %63 = vector.load %arg3[%c0_22, %c0_23, %c0_24] : memref<2x16x32xf32, #tpu.memory_space<vmem>>, vector<1x16x32xf32>
    %64 = vector.shape_cast %63 : vector<1x16x32xf32> to vector<16x32xf32>
    %cst_25 = arith.constant dense<0.000000e+00> : vector<16x32xf32>
    %65 = tpu.matmul %62, %64, %cst_25 {dimension_numbers = #tpu.dot_dimension_numbers<[1], [0], [0], [1], [0, 0, 1, 1], [], []>} : vector<16x16xf32>, vector<16x32xf32>, vector<16x32xf32> -> vector<16x32xf32>
    %66 = arith.addf %44, %65 : vector<16x32xf32>
    %67 = vector.extract_strided_slice %43 {offsets = [0, 48], sizes = [16, 16], strides = [1, 1]} : vector<16x96xf32> to vector<16x16xf32>
    %68 = vector.extract_strided_slice %43 {offsets = [0, 64], sizes = [16, 16], strides = [1, 1]} : vector<16x96xf32> to vector<16x16xf32>
    %69 = vector.extract_strided_slice %43 {offsets = [0, 80], sizes = [16, 16], strides = [1, 1]} : vector<16x96xf32> to vector<16x16xf32>
    %cst_26 = arith.constant 2.500000e-01 : f32
    %70 = vector.broadcast %cst_26 : f32 to vector<16x16xf32>
    %71 = arith.mulf %67, %70 : vector<16x16xf32>
    %cst_27 = arith.constant dense<0.000000e+00> : vector<16x16xf32>
    %72 = tpu.matmul %71, %68, %cst_27 {dimension_numbers = #tpu.dot_dimension_numbers<[1], [1], [0], [0], [0, 0, 1, 0], [], []>} : vector<16x16xf32>, vector<16x16xf32>, vector<16x16xf32> -> vector<16x16xf32>
    %73 = arith.addf %72, %38 : vector<16x16xf32>
    %cst_28 = arith.constant dense<0xFF800000> : vector<16xf32>
    %74 = vector.multi_reduction <maximumf>, %73, %cst_28 [1] : vector<16x16xf32> to vector<16xf32>
    %75 = vector.shape_cast %74 : vector<16xf32> to vector<16x1xf32>
    %76 = vector.broadcast %75 : vector<16x1xf32> to vector<16x16xf32>
    %77 = arith.subf %73, %76 : vector<16x16xf32>
    %78 = math.exp %77 : vector<16x16xf32>
    %cst_29 = arith.constant dense<0.000000e+00> : vector<16xf32>
    %79 = vector.multi_reduction <add>, %78, %cst_29 [1] : vector<16x16xf32> to vector<16xf32>
    %80 = vector.shape_cast %79 : vector<16xf32> to vector<16x1xf32>
    %81 = tpu.reciprocal %80 {approx = true} : vector<16x1xf32> -> vector<16x1xf32>
    %82 = vector.broadcast %81 : vector<16x1xf32> to vector<16x16xf32>
    %83 = arith.mulf %78, %82 : vector<16x16xf32>
    %cst_30 = arith.constant dense<0.000000e+00> : vector<16x16xf32>
    %84 = tpu.matmul %83, %69, %cst_30 {dimension_numbers = #tpu.dot_dimension_numbers<[1], [0], [0], [1], [0, 0, 1, 1], [], []>} : vector<16x16xf32>, vector<16x16xf32>, vector<16x16xf32> -> vector<16x16xf32>
    %c1 = arith.constant 1 : index
    %c0_31 = arith.constant 0 : index
    %c0_32 = arith.constant 0 : index
    %85 = vector.load %arg3[%c1, %c0_31, %c0_32] : memref<2x16x32xf32, #tpu.memory_space<vmem>>, vector<1x16x32xf32>
    %86 = vector.shape_cast %85 : vector<1x16x32xf32> to vector<16x32xf32>
    %cst_33 = arith.constant dense<0.000000e+00> : vector<16x32xf32>
    %87 = tpu.matmul %84, %86, %cst_33 {dimension_numbers = #tpu.dot_dimension_numbers<[1], [0], [0], [1], [0, 0, 1, 1], [], []>} : vector<16x16xf32>, vector<16x32xf32>, vector<16x32xf32> -> vector<16x32xf32>
    %88 = arith.addf %66, %87 : vector<16x32xf32>
    %c1_34 = arith.constant 1 : index
    %c0_35 = arith.constant 0 : index
    %89 = vector.load %arg6[%c1_34, %c0_35] : memref<8x128xf32, #tpu.memory_space<vmem>>, vector<1x32xf32>
    %90 = vector.broadcast %89 : vector<1x32xf32> to vector<16x32xf32>
    %91 = arith.addf %88, %90 : vector<16x32xf32>
    %92 = arith.addf %0, %91 : vector<16x32xf32>
    %cst_36 = arith.constant dense<0.000000e+00> : vector<16xf32>
    %93 = vector.multi_reduction <add>, %92, %cst_36 [1] : vector<16x32xf32> to vector<16xf32>
    %94 = vector.shape_cast %93 : vector<16xf32> to vector<16x1xf32>
    %cst_37 = arith.constant 3.200000e+01 : f32
    %95 = vector.broadcast %cst_37 : f32 to vector<16x1xf32>
    %96 = arith.divf %94, %95 : vector<16x1xf32>
    %97 = vector.broadcast %96 : vector<16x1xf32> to vector<16x32xf32>
    %98 = arith.subf %92, %97 : vector<16x32xf32>
    %99 = arith.mulf %98, %98 : vector<16x32xf32>
    %cst_38 = arith.constant dense<0.000000e+00> : vector<16xf32>
    %100 = vector.multi_reduction <add>, %99, %cst_38 [1] : vector<16x32xf32> to vector<16xf32>
    %101 = vector.shape_cast %100 : vector<16xf32> to vector<16x1xf32>
    %cst_39 = arith.constant 3.200000e+01 : f32
    %102 = vector.broadcast %cst_39 : f32 to vector<16x1xf32>
    %103 = arith.divf %101, %102 : vector<16x1xf32>
    %cst_40 = arith.constant 9.99999974E-6 : f32
    %104 = vector.broadcast %cst_40 : f32 to vector<16x1xf32>
    %105 = arith.addf %103, %104 : vector<16x1xf32>
    %106 = math.rsqrt %105 : vector<16x1xf32>
    %107 = vector.broadcast %106 : vector<16x1xf32> to vector<16x32xf32>
    %108 = arith.mulf %98, %107 : vector<16x32xf32>
    %c4 = arith.constant 4 : index
    %c0_41 = arith.constant 0 : index
    %109 = vector.load %arg6[%c4, %c0_41] : memref<8x128xf32, #tpu.memory_space<vmem>>, vector<1x32xf32>
    %110 = vector.broadcast %109 : vector<1x32xf32> to vector<16x32xf32>
    %111 = arith.mulf %108, %110 : vector<16x32xf32>
    %c5 = arith.constant 5 : index
    %c0_42 = arith.constant 0 : index
    %112 = vector.load %arg6[%c5, %c0_42] : memref<8x128xf32, #tpu.memory_space<vmem>>, vector<1x32xf32>
    %113 = vector.broadcast %112 : vector<1x32xf32> to vector<16x32xf32>
    %114 = arith.addf %111, %113 : vector<16x32xf32>
    %c0_43 = arith.constant 0 : index
    %c0_44 = arith.constant 0 : index
    %115 = vector.load %arg4[%c0_43, %c0_44] : memref<32x64xf32, #tpu.memory_space<vmem>>, vector<32x64xf32>
    %cst_45 = arith.constant dense<0.000000e+00> : vector<16x64xf32>
    %116 = tpu.matmul %114, %115, %cst_45 {dimension_numbers = #tpu.dot_dimension_numbers<[1], [0], [0], [1], [0, 0, 1, 1], [], []>} : vector<16x32xf32>, vector<32x64xf32>, vector<16x64xf32> -> vector<16x64xf32>
    %c2 = arith.constant 2 : index
    %c0_46 = arith.constant 0 : index
    %117 = vector.load %arg6[%c2, %c0_46] : memref<8x128xf32, #tpu.memory_space<vmem>>, vector<1x64xf32>
    %118 = vector.broadcast %117 : vector<1x64xf32> to vector<16x64xf32>
    %119 = arith.addf %116, %118 : vector<16x64xf32>
    %cst_47 = arith.constant 0.000000e+00 : f32
    %120 = vector.broadcast %cst_47 : f32 to vector<16x64xf32>
    %121 = arith.maximumf %119, %120 : vector<16x64xf32>
    %c0_48 = arith.constant 0 : index
    %c0_49 = arith.constant 0 : index
    %122 = vector.load %arg5[%c0_48, %c0_49] : memref<64x32xf32, #tpu.memory_space<vmem>>, vector<64x32xf32>
    %cst_50 = arith.constant dense<0.000000e+00> : vector<16x32xf32>
    %123 = tpu.matmul %121, %122, %cst_50 {dimension_numbers = #tpu.dot_dimension_numbers<[1], [0], [0], [1], [0, 0, 1, 1], [], []>} : vector<16x64xf32>, vector<64x32xf32>, vector<16x32xf32> -> vector<16x32xf32>
    %c3 = arith.constant 3 : index
    %c0_51 = arith.constant 0 : index
    %124 = vector.load %arg6[%c3, %c0_51] : memref<8x128xf32, #tpu.memory_space<vmem>>, vector<1x32xf32>
    %125 = vector.broadcast %124 : vector<1x32xf32> to vector<16x32xf32>
    %126 = arith.addf %123, %125 : vector<16x32xf32>
    %127 = arith.addf %114, %126 : vector<16x32xf32>
    %cst_52 = arith.constant dense<0.000000e+00> : vector<16xf32>
    %128 = vector.multi_reduction <add>, %127, %cst_52 [1] : vector<16x32xf32> to vector<16xf32>
    %129 = vector.shape_cast %128 : vector<16xf32> to vector<16x1xf32>
    %cst_53 = arith.constant 3.200000e+01 : f32
    %130 = vector.broadcast %cst_53 : f32 to vector<16x1xf32>
    %131 = arith.divf %129, %130 : vector<16x1xf32>
    %132 = vector.broadcast %131 : vector<16x1xf32> to vector<16x32xf32>
    %133 = arith.subf %127, %132 : vector<16x32xf32>
    %134 = arith.mulf %133, %133 : vector<16x32xf32>
    %cst_54 = arith.constant dense<0.000000e+00> : vector<16xf32>
    %135 = vector.multi_reduction <add>, %134, %cst_54 [1] : vector<16x32xf32> to vector<16xf32>
    %136 = vector.shape_cast %135 : vector<16xf32> to vector<16x1xf32>
    %cst_55 = arith.constant 3.200000e+01 : f32
    %137 = vector.broadcast %cst_55 : f32 to vector<16x1xf32>
    %138 = arith.divf %136, %137 : vector<16x1xf32>
    %cst_56 = arith.constant 9.99999974E-6 : f32
    %139 = vector.broadcast %cst_56 : f32 to vector<16x1xf32>
    %140 = arith.addf %138, %139 : vector<16x1xf32>
    %141 = math.rsqrt %140 : vector<16x1xf32>
    %142 = vector.broadcast %141 : vector<16x1xf32> to vector<16x32xf32>
    %143 = arith.mulf %133, %142 : vector<16x32xf32>
    %c6 = arith.constant 6 : index
    %c0_57 = arith.constant 0 : index
    %144 = vector.load %arg6[%c6, %c0_57] : memref<8x128xf32, #tpu.memory_space<vmem>>, vector<1x32xf32>
    %145 = vector.broadcast %144 : vector<1x32xf32> to vector<16x32xf32>
    %146 = arith.mulf %143, %145 : vector<16x32xf32>
    %c7 = arith.constant 7 : index
    %c0_58 = arith.constant 0 : index
    %147 = vector.load %arg6[%c7, %c0_58] : memref<8x128xf32, #tpu.memory_space<vmem>>, vector<1x32xf32>
    %148 = vector.broadcast %147 : vector<1x32xf32> to vector<16x32xf32>
    %149 = arith.addf %146, %148 : vector<16x32xf32>
    %c0_59 = arith.constant 0 : index
    %c0_60 = arith.constant 0 : index
    %150 = vector.load %arg7[%c0_59, %c0_60] : memref<16x32xf32, #tpu.memory_space<vmem>>, vector<16x32xf32>
    tpu.vector_store %arg7[%c0_59, %c0_60], %149 {strides = array<i32>} : memref<16x32xf32, #tpu.memory_space<vmem>>, vector<16x32xf32>,
    return
  }
  func.func @transform_0(%arg0: i32) -> (i32, i32) {
    %c0_i32 = arith.constant 0 : i32
    %c0_i32_0 = arith.constant 0 : i32
    %c0_i32_1 = arith.constant 0 : i32
    return %c0_i32, %c0_i32_0 : i32, i32
  }
  func.func @transform_1(%arg0: i32) -> (i32, i32) {
    %c0_i32 = arith.constant 0 : i32
    %c0_i32_0 = arith.constant 0 : i32
    %c0_i32_1 = arith.constant 0 : i32
    return %c0_i32, %c0_i32_0 : i32, i32
  }
  func.func @transform_2(%arg0: i32) -> (i32, i32, i32) {
    %c0_i32 = arith.constant 0 : i32
    %c0_i32_0 = arith.constant 0 : i32
    %c0_i32_1 = arith.constant 0 : i32
    %c0_i32_2 = arith.constant 0 : i32
    return %c0_i32, %c0_i32_0, %c0_i32_1 : i32, i32, i32
  }
  func.func @transform_3(%arg0: i32) -> (i32, i32) {
    %c0_i32 = arith.constant 0 : i32
    %c0_i32_0 = arith.constant 0 : i32
    %c0_i32_1 = arith.constant 0 : i32
    return %c0_i32, %c0_i32_0 : i32, i32
  }
  func.func @transform_4(%arg0: i32) -> (i32, i32) {
    %c0_i32 = arith.constant 0 : i32
    %c0_i32_0 = arith.constant 0 : i32
    %c0_i32_1 = arith.constant 0 : i32
    return %c0_i32, %c0_i32_0 : i32, i32
  }
  func.func @transform_5(%arg0: i32) -> (i32, i32) {
    %c0_i32 = arith.constant 0 : i32
    %c0_i32_0 = arith.constant 0 : i32
    %c0_i32_1 = arith.constant 0 : i32
    return %c0_i32, %c0_i32_0 : i32, i32
  }
  func.func @transform_6(%arg0: i32) -> (i32, i32) {
    %c0_i32 = arith.constant 0 : i32
    %c0_i32_0 = arith.constant 0 : i32
    %c0_i32_1 = arith.constant 0 : i32
    return %c0_i32, %c0_i32_0 : i32, i32
  }
}

</mosaic_0001>

<bundles_post_ra>
// kernel: mix_transformer_layer.1
= control target key start
LH: loop header
LB: loop body
LE: loop exit
PB: predicated region body
PF: predicated region fallthrough
CT: control target
= control target key end

     0   :  { %11 = vsyncpa [#allocation3], 0  ;;  %s955_s0 = inlined_call_operand.hbm [shape: f32[16,32], index: 0, kind: input, shape index: {}]   ;;  %s956_s1 = inlined_call_operand.vmem [shape: f32[32,96], index: 1, kind: input, shape index: {}]   ;;  %s957_s2 = inlined_call_operand.vmem [shape: f32[2,16,32], index: 2, kind: input, shape index: {}]   ;;  %s958_s3 = inlined_call_operand.vmem [shape: f32[32,64], index: 3, kind: input, shape index: {}]   ;;  %s959_s4 = inlined_call_operand.vmem [shape: f32[64,32], index: 4, kind: input, shape index: {}]   ;;  %s960_s5 = inlined_call_operand.hbm [shape: f32[8,128], index: 5, kind: input, shape index: {}]   ;;  %s961_s6 = inlined_call_operand.hbm [shape: f32[16,32], index: 6, kind: output, shape index: {}]  }
   0x1   :  { %12 = vsyncpa [#allocation6], 0 }
   0x2   :  { %13 = vsyncpa [#allocation4], 0  ;;  %s18_s23 = sshll.u32 %s955_s0, 4  ;;  %s773_s24 = smov [#allocation2]   ;;  %s19_s23 = int_to_ptr.hbm [resolvable:$true] %s18_s23 }
   0x3   :  { %s20_s25 = sshll.u32 %s773_s24, 4  ;;  %s40_s28 = sshll.u32 %s960_s5, 4  ;;  %s21_s25 = int_to_ptr.vmem [resolvable:$true] %s20_s25  ;;  %s41_s28 = int_to_ptr.hbm [resolvable:$true] %s40_s28 }
   0x4   :  { %s774_s29 = smov 128   ;;  %s775_s30 = smov 8  }
   0x5   :  { %26 = dma.hbm_to_vmem [thread:$0]  %s19_s23, 256, %s21_s25, [#allocation3], %s774_s29, %s774_s29, %s775_s30  }
   0x6   :  { %s776_s7 = smov [#allocation5]  }
   0x7   :  { %s42_s8 = sshll.u32 %s776_s7, 4  ;;  %s43_s8 = int_to_ptr.vmem [resolvable:$true] %s42_s8 }
   0x8   :  { %45 = dma.hbm_to_vmem [thread:$0]  %s41_s28, 128, %s43_s8, [#allocation6]  }
   0x9   :  { %767 = dma.done.wait [#allocation3], 256  }
   0xa   :  { %768 = vsyncadd [#allocation3], 4294967040 }
   0xb   :  { %769 = dma.done.wait [#allocation6], 128  }
   0xc   :  { %770 = vsyncadd [#allocation6], 4294967168  ;;  %v104_v0 = vld [vmem:[%s956_s1 + $0x18] sm:$0xff]  ;;  %v103_v1 = vld [vmem:[%s956_s1 + $0x10] sm:$0xff]  ;;  %vm107_vm0 = vcmask 261120   ;;  %s777_s15 = smov 80   ;;  %v56_v20 = vlaneseq }
   0xd   :  { %126 = vmatpush.msra.mxu0 %v104_v0  ;;  %v102_v2 = vld [vmem:[%s956_s1 + $0x8] sm:$0xff]  ;;  %v101_v3 = vld [vmem:[%s956_s1] sm:$0xff]  ;;  %v661_v6 = vld [vmem:[#allocation5] ss:$0 sm:$0xff]  ;;  %s778_s1 = smov 64   ;;  %s779_s16 = smov 112  }
   0xe   :  { %v841_v4 = vld [vmem:[#allocation2] sm:$0xff]  ;;  %v845_v5 = vld [vmem:[#allocation2 + $0x8] sm:$0xff]  ;;  %vm145_vm1 = vcmask 130048   ;;  %v57_v21 = vshrl.u32 %v56_v20, 7  ;;  %v84_v22 = vand.u32 127, %v56_v20  ;;  %s781_s17 = smov 96  }
   0xf   :  { %127 = vmatpush.msra.mxu0 %v103_v1  ;;  %v780_v26 = vmov -1e+30   ;;  %s782_s18 = smov 48   ;;  %v237_v1 = vld [vmem:[%s957_s2 + $0x8] sm:$0xff]  ;;  %v236_v20 = vld [vmem:[%s957_s2] sm:$0xff]  ;;  %vm507_vm11 = vcmask 523264  }
  0x10   :  { %v63_v23 = vand.u32 1, %v57_v21  ;;  %v89_v24 = vand.u32 1, %v84_v22  ;;  %v58_v25 = vadd.s32 8, %v57_v21  ;;  %v627_v21 = vld [vmem:[%s957_s2 + $0x10] sm:$0xff] }
  0x11   :  { %128 = vmatpush.msra.mxu0 %v102_v2 }
  0x12   :  { %vm97_vm2 = vcmp.eq.s32.totalorder %v63_v23, %v89_v24  ;;  %v70_v28 = vand.u32 1, %v58_v25 }
  0x13   :  { %129 = vmatpush.msra.mxu0 %v101_v3  ;;  %v99_v27 = vsel %vm97_vm2, 0.0, %v780_v26 }
  0x14   :  { %613 = vmatmul.msk.f32.vlgmr.msra.gmra.mxu0 %vm107_vm0, %v841_v4  ;;  %vm98_vm3 = vcmp.eq.s32.totalorder %v70_v28, %v89_v24 }
  0x15   :  { %v100_v33 = vsel %vm98_vm3, 0.0, %v780_v26 }
  0x1c   :  { %614 = vmatmul.msk.f32.gmra.mxu0 %vm107_vm0, %v845_v5 }
  0x91   :  { %v131_v7 = vpop.f32.mrf.mxu0 }
  0x92   :  { %v132_v8 = vadd.f32 %v661_v6, %v131_v7 }
  0x94   :  { %v137_v9 = vmul.f32 0.25, %v132_v8 }
  0x96   :  { %238 = vrot.lane.b32.xlu2 %v137_v9, %s777_s15 }
  0x99   :  { %v134_v10 = vpop.f32.mrf.mxu0 }
  0x9a   :  { %v135_v11 = vadd.f32 %v661_v6, %v134_v10 }
  0x9c   :  { %244 = vrot.lane.b32.xlu1 %v135_v11, %s778_s1  ;;  %143 = vrot.lane.b32.xlu0 %v135_v11, %s779_s16  ;;  %v138_v12 = vmul.f32 0.25, %v135_v11  ;;  %v849_v13 = vpack.i.bf16 %v132_v8, %v135_v11 }
  0x9e   :  { %240 = vrot.lane.b32.xlu2 %v138_v12, %s777_s15 }
  0xa4   :  { %242 = vrot.lane.b32.xlu1 %v132_v8, %s778_s1  ;;  %141 = vrot.lane.b32.xlu0 %v132_v8, %s779_s16 }
  0xf0   :  { %v239_v18 = vpop.permute.xlu2 %238 }
  0xf8   :  { %v241_v19 = vpop.permute.xlu2 %240 }
 0x10e   :  { %v245_v14 = vpop.permute.xlu1 %244  ;;  %v144_v15 = vpop.permute.xlu0 %143 }
 0x10f   :  { %615 = vmatpush.xpose.msk.msra.mxu1 %vm145_vm1, %v144_v15  ;;  %621 = vmatpush.xpose.msk.msra.mxu3 %vm145_vm1, %v245_v14 }
 0x116   :  { %v243_v16 = vpop.permute.xlu1 %242  ;;  %v142_v17 = vpop.permute.xlu0 %141 }
 0x117   :  { %616 = vmatpush.xpose.msk.msra.mxu1 %vm145_vm1, %v142_v17  ;;  %622 = vmatpush.xpose.msk.msra.mxu3 %vm145_vm1, %v243_v16 }
 0x11a   :  { %617 = vmatmul.msk.f32.vlgmr.msra.gmra.mxu1 %vm145_vm1, %v137_v9  ;;  %623 = vmatmul.msk.f32.vlgmr.msra.gmra.mxu3 %vm145_vm1, %v239_v18 }
 0x11b   :  { %386 = vmatpush.msrb.mxu1 %v237_v1 }
 0x11d   :  { %387 = vmatpush.msrb.mxu1 %v236_v20  ;;  %v664_v20 = vld [vmem:[#allocation5 + $0x5] ss:$0 sm:$0xff] }
 0x122   :  { %618 = vmatmul.msk.f32.gmra.mxu1 %vm145_vm1, %v138_v12  ;;  %624 = vmatmul.msk.f32.gmra.mxu3 %vm145_vm1, %v241_v19  ;;  %v628_v19 = vld [vmem:[%s957_s2 + $0x18] sm:$0xff]  ;;  %s599_s2 = sshll.u32 %s961_s6, 4  ;;  %s600_s2 = int_to_ptr.hbm [resolvable:$true] %s599_s2 }
 0x197   :  { %v173_v29 = vpop.f32.mrf.mxu1 }
 0x198   :  { %v174_v30 = vadd.f32 %v173_v29, %v99_v27 }
 0x19a   :  { %v179_v31 = vsel %vm145_vm1, %v174_v30, -inf }
 0x19b   :  { %180 = vmax.xlane.f32.xlu2 %v179_v31 }
 0x19d   :  { %v271_v32 = vpop.f32.mrf.mxu3 }
 0x19e   :  { %v272_v34 = vadd.f32 %v271_v32, %v99_v27  ;;  %v662_v27 = vld [vmem:[#allocation5 + $0x1] ss:$0 sm:$0xff] }
 0x19f   :  { %v176_v35 = vpop.f32.mrf.mxu1 }
 0x1a0   :  { %v177_v36 = vadd.f32 %v176_v35, %v100_v33  ;;  %v277_v37 = vsel %vm145_vm1, %v272_v34, -inf }
 0x1a1   :  { %278 = vmax.xlane.f32.xlu1 %v277_v37 }
 0x1a2   :  { %v182_v38 = vsel %vm145_vm1, %v177_v36, -inf }
 0x1a3   :  { %183 = vmax.xlane.f32.xlu0 %v182_v38 }
 0x1a5   :  { %v274_v39 = vpop.f32.mrf.mxu3 }
 0x1a6   :  { %v275_v40 = vadd.f32 %v274_v39, %v100_v33  ;;  %v783_v39 = vmov 32.0  }
 0x1a8   :  { %v280_v41 = vsel %vm145_vm1, %v275_v40, -inf }
 0x1a9   :  { %281 = vmax.xlane.f32.xlu2 %v280_v41 }
 0x1ba   :  { %652 = vrot.lane.b32.xlu1 %v849_v13, %s781_s17 }
 0x20e   :  { %v181_v44 = vpop.xlane.xlu2 %180 }
 0x20f   :  { %v185_v48 = vsub.f32 %v174_v30, %v181_v44 }
 0x211   :  { %v187_v50 = vmul.f32 1.442695, %v185_v48 }
 0x214   :  { %v279_v42 = vpop.xlane.xlu1 %278 }
 0x215   :  { %v283_v43 = vsub.f32 %v272_v34, %v279_v42 }
 0x216   :  { %v184_v45 = vpop.xlane.xlu0 %183 }
 0x217   :  { %v285_v46 = vmul.f32 1.442695, %v283_v43  ;;  %v186_v47 = vsub.f32 %v177_v36, %v184_v45 }
 0x219   :  { %669 = vpow2.f32 %v285_v46  ;;  %v189_v49 = vmul.f32 1.442695, %v186_v47 }
 0x21b   :  { %671 = vpow2.f32 %v189_v49 }
 0x21c   :  { %v282_v51 = vpop.xlane.xlu2 %281  ;;  %673 = vpow2.f32 %v187_v50 }
 0x21d   :  { %v284_v55 = vsub.f32 %v275_v40, %v282_v51 }
 0x21f   :  { %v670_v52 = vpop.eup %669  ;;  %v287_v57 = vmul.f32 1.442695, %v284_v55  ;;  %v462_v55 = vld [vmem:[%s958_s3 + $0x10] sm:$0xff] }
 0x220   :  { %v289_v53 = vsel %vm145_vm1, %v670_v52, 0.0 }
 0x221   :  { %v672_v54 = vpop.eup %671  ;;  %290 = vadd.xlane.f32.xlu2 %v289_v53  ;;  %675 = vpow2.f32 %v287_v57  ;;  %v460_v57 = vld [vmem:[%s958_s3] sm:$0xff] }
 0x222   :  { %v194_v56 = vsel %vm145_vm1, %v672_v54, 0.0  ;;  %v674_v58 = vpop.eup %673 }
 0x223   :  { %195 = vadd.xlane.f32.xlu0 %v194_v56  ;;  %v191_v59 = vsel %vm145_vm1, %v674_v58, 0.0  ;;  %v461_v56 = vld [vmem:[%s958_s3 + $0x8] sm:$0xff] }
 0x227   :  { %v676_v62 = vpop.eup %675 }
 0x228   :  { %v292_v0 = vsel %vm145_vm1, %v676_v62, 0.0 }
 0x22b   :  { %192 = vadd.xlane.f32.xlu0 %v191_v59 }
 0x22c   :  { %v653_v60 = vpop.permute.xlu1 %652 }
 0x22d   :  { %v654_v61 = vunpack.i.l.bf16 %v653_v60  ;;  %v655_v63 = vunpack.i.h.bf16 %v653_v60 }
 0x22f   :  { %227 = vmatpush.msrb.mxu0 %v654_v61  ;;  %637 = vmatpush.msra.mxu2 %v654_v61  ;;  %v504_v61 = vld [vmem:[%s959_s4 + $0x38] sm:$0xff] }
 0x231   :  { %228 = vmatpush.msrb.mxu0 %v655_v63  ;;  %638 = vmatpush.msra.mxu2 %v655_v63  ;;  %v502_v63 = vld [vmem:[%s959_s4 + $0x28] sm:$0xff] }
 0x233   :  { %293 = vadd.xlane.f32.xlu0 %v292_v0  ;;  %357 = vmatpush.msra.mxu0 %v628_v19 }
 0x235   :  { %358 = vmatpush.msra.mxu0 %v627_v21 }
 0x239   :  { %657 = vrot.lane.b32.xlu2 %v849_v13, %s782_s18 }
 0x294   :  { %v291_v2 = vpop.xlane.xlu2 %290 }
 0x296   :  { %v196_v3 = vpop.xlane.xlu0 %195 }
 0x297   :  { %677 = vrcp.f32 %v196_v3 }
 0x298   :  { %679 = vrcp.f32 %v291_v2  ;;  %v501_v2 = vld [vmem:[%s959_s4 + $0x20] sm:$0xff] }
 0x29c   :  { %v658_v6 = vpop.permute.xlu2 %657 }
 0x29d   :  { %v678_v7 = vpop.eup %677  ;;  %v659_v8 = vunpack.i.l.bf16 %v658_v6  ;;  %v660_v11 = vunpack.i.h.bf16 %v658_v6 }
 0x29e   :  { %v193_v9 = vpop.xlane.xlu0 %192  ;;  %v200_v10 = vmul.f32 %v678_v7, %v672_v54  ;;  %v680_v12 = vpop.eup %679  ;;  %v463_v54 = vld [vmem:[%s958_s3 + $0x18] sm:$0xff] }
 0x29f   :  { %681 = vrcp.f32 %v193_v9  ;;  %325 = vmatpush.msrb.mxu2 %v659_v8  ;;  %v297_v16 = vmul.f32 %v680_v12, %v670_v52  ;;  %484 = vmatpush.msrb.mxu3 %v463_v54  ;;  %v500_v7 = vld [vmem:[%s959_s4 + $0x18] sm:$0xff]  ;;  %v499_v9 = vld [vmem:[%s959_s4 + $0x10] sm:$0xff] }
 0x2a0   :  { %620 = vmatmul.msk.f32.vlgmr.msra.gmra.mxu2 %vm145_vm1, %v200_v10 }
 0x2a1   :  { %326 = vmatpush.msrb.mxu2 %v660_v11  ;;  %485 = vmatpush.msrb.mxu3 %v462_v55 }
 0x2a3   :  { %486 = vmatpush.msrb.mxu3 %v461_v56  ;;  %522 = vmatpush.msra.mxu2 %v504_v61 }
 0x2a5   :  { %v682_v13 = vpop.eup %681  ;;  %487 = vmatpush.msrb.mxu3 %v460_v57 }
 0x2a6   :  { %v294_v14 = vpop.xlane.xlu0 %293  ;;  %v199_v15 = vmul.f32 %v682_v13, %v674_v58 }
 0x2a7   :  { %683 = vrcp.f32 %v294_v14 }
 0x2a8   :  { %619 = vmatmul.msk.f32.vlgmr.msrb.gmra.mxu0 %vm145_vm1, %v199_v15  ;;  %625 = vmatmul.msk.f32.vlgmr.msrb.gmra.mxu2 %vm145_vm1, %v297_v16  ;;  %685 = vrcp.f32 %v783_v39  ;;  %v663_v16 = vld [vmem:[#allocation5 + $0x4] ss:$0 sm:$0xff]  ;;  %v666_v39 = vld [vmem:[#allocation5 + $0x3] ss:$0 sm:$0xff] }
 0x2ad   :  { %v684_v17 = vpop.eup %683 }
 0x2ae   :  { %v298_v18 = vmul.f32 %v684_v17, %v676_v62  ;;  %v686_v40 = vpop.eup %685  ;;  %v503_v62 = vld [vmem:[%s959_s4 + $0x30] sm:$0xff] }
 0x2af   :  { %v408_v41 = vmul.f32 32.0, %v686_v40  ;;  %vm412_vm4 = vweird.f32 %v686_v40  ;;  %523 = vmatpush.msra.mxu2 %v503_v62 }
 0x2b0   :  { %626 = vmatmul.msk.f32.gmra.mxu2 %vm145_vm1, %v298_v18 }
 0x2b1   :  { %v409_v42 = vsub.f32 1.0, %v408_v41  ;;  %524 = vmatpush.msra.mxu2 %v502_v63 }
 0x2b3   :  { %v410_v43 = vmul.f32 %v686_v40, %v409_v42  ;;  %525 = vmatpush.msra.mxu2 %v501_v2 }
 0x2b5   :  { %v411_v44 = vadd.f32 %v686_v40, %v410_v43  ;;  %526 = vmatpush.msra.mxu2 %v500_v7 }
 0x2b7   :  { %527 = vmatpush.msra.mxu2 %v499_v9  ;;  %v667_v9 = vld [vmem:[#allocation5 + $0x6] ss:$0 sm:$0xff] }
 0x323   :  { %v233_v22 = vpop.f32.mrf.mxu2 }
 0x325   :  { %v230_v23 = vpop.f32.mrf.mxu0 }
 0x326   :  { %631 = vmatmul.msk.f32.vlgmr.msrb.gmra.mxu1 %vm145_vm1, %v230_v23 }
 0x32b   :  { %v328_v24 = vpop.f32.mrf.mxu2 }
 0x32c   :  { %629 = vmatmul.msk.f32.vlgmr.msra.gmra.mxu0 %vm145_vm1, %v328_v24 }
 0x32e   :  { %632 = vmatmul.msk.f32.gmra.mxu1 %vm145_vm1, %v233_v22 }
 0x333   :  { %v331_v25 = vpop.f32.mrf.mxu2 }
 0x334   :  { %630 = vmatmul.msk.f32.gmra.mxu0 %vm145_vm1, %v331_v25 }
 0x3a3   :  { %v389_v26 = vpop.f32.mrf.mxu1 }
 0x3a9   :  { %v360_v28 = vpop.f32.mrf.mxu0 }
 0x3aa   :  { %v390_v29 = vadd.f32 %v389_v26, %v360_v28 }
 0x3ab   :  { %v392_v33 = vpop.f32.mrf.mxu1 }
 0x3ac   :  { %v397_v30 = vadd.f32 %v662_v27, %v390_v29 }
 0x3ae   :  { %v399_v31 = vadd.f32 %v397_v30, %v841_v4  ;;  %v893_v4 = vsel %vm412_vm4, %v686_v40, %v411_v44  ;;  %v498_v30 = vld [vmem:[%s959_s4 + $0x8] sm:$0xff] }
 0x3af   :  { %528 = vmatpush.msra.mxu2 %v498_v30 }
 0x3b0   :  { %v401_v32 = vsel %vm107_vm0, %v399_v31, 0.0 }
 0x3b1   :  { %402 = vadd.xlane.f32.xlu0 %v401_v32  ;;  %v363_v34 = vpop.f32.mrf.mxu0  ;;  %v665_v32 = vld [vmem:[#allocation5 + $0x2] ss:$0 sm:$0xff] }
 0x3b2   :  { %v393_v35 = vadd.f32 %v392_v33, %v363_v34 }
 0x3b4   :  { %v398_v36 = vadd.f32 %v662_v27, %v393_v35 }
 0x3b6   :  { %v400_v37 = vadd.f32 %v398_v36, %v845_v5 }
 0x3b8   :  { %v404_v38 = vsel %vm107_vm0, %v400_v37, 0.0 }
 0x3b9   :  { %405 = vadd.xlane.f32.xlu1 %v404_v38 }
 0x424   :  { %v403_v45 = vpop.xlane.xlu0 %402 }
 0x425   :  { %v414_v46 = vmul.f32 %v893_v4, %v403_v45 }
 0x427   :  { %v416_v47 = vsub.f32 %v399_v31, %v414_v46  ;;  %v497_v31 = vld [vmem:[%s959_s4] sm:$0xff]  ;;  %s784_s4 = smov [#allocation7]  }
 0x428   :  { %529 = vmatpush.msra.mxu2 %v497_v31  ;;  %s597_s24 = sshll.u32 %s784_s4, 4  ;;  %s598_s24 = int_to_ptr.vmem [resolvable:$true] %s597_s24 }
 0x429   :  { %v418_v48 = vmul.f32 %v416_v47, %v416_v47 }
 0x42b   :  { %v420_v5 = vsel %vm107_vm0, %v418_v48, 0.0 }
 0x42c   :  { %421 = vadd.xlane.f32.xlu0 %v420_v5  ;;  %v406_v49 = vpop.xlane.xlu1 %405 }
 0x42d   :  { %v415_v50 = vmul.f32 %v893_v4, %v406_v49 }
 0x42f   :  { %v417_v51 = vsub.f32 %v400_v37, %v415_v50 }
 0x431   :  { %v419_v52 = vmul.f32 %v417_v51, %v417_v51 }
 0x433   :  { %v423_v53 = vsel %vm107_vm0, %v419_v52, 0.0 }
 0x434   :  { %424 = vadd.xlane.f32.xlu2 %v423_v53 }
 0x49f   :  { %v422_v58 = vpop.xlane.xlu0 %421 }
 0x4a0   :  { %v426_v59 = vmul.f32 %v422_v58, %v893_v4 }
 0x4a2   :  { %v428_v60 = vadd.f32 1e-05, %v426_v59 }
 0x4a4   :  { %687 = vrsqrt.f32 %v428_v60  ;;  %vm436_vm6 = vweird.f32 %v428_v60 }
 0x4a7   :  { %v425_v0 = vpop.xlane.xlu2 %424 }
 0x4a8   :  { %v427_v1 = vmul.f32 %v425_v0, %v893_v4 }
 0x4aa   :  { %v688_v3 = vpop.eup %687  ;;  %v429_v6 = vadd.f32 1e-05, %v427_v1 }
 0x4ab   :  { %v431_v8 = vmul.f32 %v688_v3, %v428_v60  ;;  %vm437_vm5 = vweird.f32 %v688_v3 }
 0x4ac   :  { %689 = vrsqrt.f32 %v429_v6  ;;  %vm438_vm7 = vmor %vm436_vm6, %vm437_vm5  ;;  %vm446_vm9 = vweird.f32 %v429_v6 }
 0x4ad   :  { %v432_v10 = vmul.f32 %v688_v3, %v431_v8 }
 0x4af   :  { %v433_v11 = vmul.f32 0.5, %v432_v10 }
 0x4b1   :  { %v434_v12 = vsub.f32 1.5, %v433_v11 }
 0x4b2   :  { %v690_v13 = vpop.eup %689 }
 0x4b3   :  { %v435_v14 = vmul.f32 %v688_v3, %v434_v12  ;;  %v441_v15 = vmul.f32 %v690_v13, %v429_v6  ;;  %vm447_vm8 = vweird.f32 %v690_v13 }
 0x4b4   :  { %vm448_vm10 = vmor %vm446_vm9, %vm447_vm8 }
 0x4b5   :  { %v439_v17 = vsel %vm438_vm7, %v688_v3, %v435_v14  ;;  %v442_v18 = vmul.f32 %v690_v13, %v441_v15 }
 0x4b6   :  { %v450_v19 = vmul.f32 %v439_v17, %v416_v47 }
 0x4b7   :  { %v443_v21 = vmul.f32 0.5, %v442_v18 }
 0x4b8   :  { %v454_v22 = vmul.f32 %v663_v16, %v450_v19 }
 0x4b9   :  { %v444_v23 = vsub.f32 1.5, %v443_v21 }
 0x4ba   :  { %v458_v24 = vadd.f32 %v664_v20, %v454_v22 }
 0x4bb   :  { %v445_v25 = vmul.f32 %v690_v13, %v444_v23 }
 0x4bc   :  { %633 = vmatmul.msk.f32.vlgmr.msrb.gmra.mxu3 %vm107_vm0, %v458_v24 }
 0x4bd   :  { %v449_v26 = vsel %vm448_vm10, %v690_v13, %v445_v25  ;;  %v668_v13 = vld [vmem:[#allocation5 + $0x7] ss:$0 sm:$0xff] }
 0x4be   :  { %v451_v27 = vmul.f32 %v449_v26, %v417_v51 }
 0x4c0   :  { %v455_v28 = vmul.f32 %v663_v16, %v451_v27 }
 0x4c2   :  { %v459_v29 = vadd.f32 %v664_v20, %v455_v28 }
 0x4c4   :  { %634 = vmatmul.msk.f32.gmra.mxu3 %vm107_vm0, %v459_v29 }
 0x53f   :  { %v489_v33 = vpop.f32.mrf.mxu3 }
 0x540   :  { %v490_v34 = vadd.f32 %v665_v32, %v489_v33 }
 0x542   :  { %v495_v35 = vmax.f32 %v490_v34, 0.0 }
 0x544   :  { %635 = vmatmul.msk.f32.vlgmr.msra.gmra.mxu2 %vm507_vm11, %v495_v35 }
 0x547   :  { %v492_v36 = vpop.f32.mrf.mxu3 }
 0x548   :  { %v493_v37 = vadd.f32 %v665_v32, %v492_v36 }
 0x54a   :  { %v496_v38 = vmax.f32 %v493_v37, 0.0 }
 0x54c   :  { %636 = vmatmul.msk.f32.gmra.mxu2 %vm507_vm11, %v496_v38 }
 0x5c7   :  { %v531_v40 = vpop.f32.mrf.mxu2 }
 0x5c8   :  { %v532_v41 = vadd.f32 %v666_v39, %v531_v40 }
 0x5ca   :  { %v537_v42 = vadd.f32 %v532_v41, %v458_v24 }
 0x5cc   :  { %v539_v43 = vsel %vm107_vm0, %v537_v42, 0.0 }
 0x5cd   :  { %540 = vadd.xlane.f32.xlu0 %v539_v43 }
 0x5cf   :  { %v534_v44 = vpop.f32.mrf.mxu2 }
 0x5d0   :  { %v535_v45 = vadd.f32 %v666_v39, %v534_v44 }
 0x5d2   :  { %v538_v46 = vadd.f32 %v535_v45, %v459_v29 }
 0x5d4   :  { %v542_v47 = vsel %vm107_vm0, %v538_v46, 0.0 }
 0x5d5   :  { %543 = vadd.xlane.f32.xlu0 %v542_v47 }
 0x640   :  { %v541_v48 = vpop.xlane.xlu0 %540 }
 0x641   :  { %v545_v5 = vmul.f32 %v541_v48, %v893_v4 }
 0x643   :  { %v547_v49 = vsub.f32 %v537_v42, %v545_v5 }
 0x645   :  { %v549_v50 = vmul.f32 %v547_v49, %v547_v49 }
 0x647   :  { %v551_v51 = vsel %vm107_vm0, %v549_v50, 0.0 }
 0x648   :  { %552 = vadd.xlane.f32.xlu0 %v551_v51  ;;  %v544_v52 = vpop.xlane.xlu0 %543 }
 0x649   :  { %v546_v53 = vmul.f32 %v544_v52, %v893_v4 }
 0x64b   :  { %v548_v54 = vsub.f32 %v538_v46, %v546_v53 }
 0x64d   :  { %v550_v55 = vmul.f32 %v548_v54, %v548_v54 }
 0x64f   :  { %v554_v56 = vsel %vm107_vm0, %v550_v55, 0.0 }
 0x650   :  { %555 = vadd.xlane.f32.xlu0 %v554_v56 }
 0x6bb   :  { %v553_v57 = vpop.xlane.xlu0 %552 }
 0x6bc   :  { %v557_v58 = vmul.f32 %v553_v57, %v893_v4 }
 0x6be   :  { %v559_v59 = vadd.f32 1e-05, %v557_v58 }
 0x6c0   :  { %691 = vrsqrt.f32 %v559_v59  ;;  %vm567_vm13 = vweird.f32 %v559_v59 }
 0x6c3   :  { %v556_v60 = vpop.xlane.xlu0 %555 }
 0x6c4   :  { %v558_v61 = vmul.f32 %v556_v60, %v893_v4 }
 0x6c6   :  { %v692_v62 = vpop.eup %691  ;;  %v560_v63 = vadd.f32 1e-05, %v558_v61 }
 0x6c7   :  { %v562_v0 = vmul.f32 %v692_v62, %v559_v59  ;;  %vm568_vm12 = vweird.f32 %v692_v62 }
 0x6c8   :  { %693 = vrsqrt.f32 %v560_v63  ;;  %vm569_vm14 = vmor %vm567_vm13, %vm568_vm12  ;;  %vm577_vm1 = vweird.f32 %v560_v63 }
 0x6c9   :  { %v563_v1 = vmul.f32 %v692_v62, %v562_v0 }
 0x6cb   :  { %v564_v2 = vmul.f32 0.5, %v563_v1 }
 0x6cd   :  { %v565_v3 = vsub.f32 1.5, %v564_v2 }
 0x6ce   :  { %v694_v6 = vpop.eup %693 }
 0x6cf   :  { %v566_v7 = vmul.f32 %v692_v62, %v565_v3  ;;  %v572_v8 = vmul.f32 %v694_v6, %v560_v63  ;;  %vm578_vm15 = vweird.f32 %v694_v6 }
 0x6d0   :  { %vm579_vm2 = vmor %vm577_vm1, %vm578_vm15 }
 0x6d1   :  { %v570_v10 = vsel %vm569_vm14, %v692_v62, %v566_v7  ;;  %v573_v11 = vmul.f32 %v694_v6, %v572_v8 }
 0x6d2   :  { %v581_v12 = vmul.f32 %v570_v10, %v547_v49 }
 0x6d3   :  { %v574_v14 = vmul.f32 0.5, %v573_v11 }
 0x6d4   :  { %v585_v4 = vmul.f32 %v667_v9, %v581_v12 }
 0x6d5   :  { %v575_v15 = vsub.f32 1.5, %v574_v14 }
 0x6d6   :  { %v589_v16 = vadd.f32 %v668_v13, %v585_v4 }
 0x6d7   :  { %v576_v17 = vmul.f32 %v694_v6, %v575_v15 }
 0x6d8   :  { %591 = vst.msk [vmem:[#allocation7] sm:$0xff] %vm107_vm0, %v589_v16 }
 0x6d9   :  { %v580_v18 = vsel %vm579_vm2, %v694_v6, %v576_v17 }
 0x6da   :  { %v582_v19 = vmul.f32 %v580_v18, %v548_v54 }
 0x6dc   :  { %v586_v20 = vmul.f32 %v667_v9, %v582_v19 }
 0x6de   :  { %v590_v21 = vadd.f32 %v668_v13, %v586_v20 }
 0x6e0   :  { %592 = vst.msk [vmem:[#allocation7 + $0x8] sm:$0xff] %vm107_vm0, %v590_v21 }
 0x6e1   :  { %605 = dma.vmem_to_hbm [thread:$0]  %s598_s24, 256, %s600_s2, [#allocation4], %s774_s29, %s774_s29, %s775_s30  }
 0x6e2   :  { %771 = dma.done.wait [#allocation4], 256  }
 0x6e3   :  { %772 = vsyncadd [#allocation4], 4294967040 }
 0x6e4   :  { %610 = vsyncpa [#allocation3], 1 }
 0x6e5   :  { %611 = vsyncpa [#allocation6], 1 }
 0x6e6   :  { %612 = vsyncpa [#allocation4], 1 }

</bundles_post_ra>
